<compile_context>
chip_gen: v5e
topology: v5e:2x2
jax: 0.10.0
libtpu: 0.0.40
codegen_flags: <defaults>
</compile_context>

<pallas_src>
import jax
import jax.numpy as jnp
from jax.experimental import pallas as pl
from jax.experimental.pallas import tpu as pltpu


# --------------------------- Fused CBAM kernel -----------------------------
def _cbam_kernel(x_ref, w1t_ref, w2t_ref, m_ref, b_ref, o_ref):
    bias = b_ref[0]
    w1t = w1t_ref[...].astype(jnp.float32)              # (C, Cr)
    w2t = w2t_ref[...].astype(jnp.float32)              # (Cr, C)

    x = x_ref[...].astype(jnp.float32)                  # (Bt, C, HW) lane-dense

    # -------- channel attention: lane reductions + batched tiny MLP --------
    avg_c = jnp.mean(x, axis=2)                         # (Bt, C)
    max_c = jnp.max(x, axis=2)                          # (Bt, C)

    def mlp(v):                                         # shared MLP, all images at once
        h = jnp.maximum(
            jnp.dot(v, w1t, preferred_element_type=jnp.float32), 0.0)
        return jnp.dot(h, w2t, preferred_element_type=jnp.float32)

    c_attn = jax.nn.sigmoid(mlp(avg_c) + mlp(max_c))    # (Bt, C)
    ca = x * c_attn[:, :, None]                         # (Bt, C, HW)

    # -------- spatial attention: sublane reductions + Toeplitz conv (MXU) --
    avgmap = jnp.mean(ca, axis=1)                       # (Bt, HW)
    maxmap = jnp.max(ca, axis=1)                        # (Bt, HW)
    conv = (jnp.dot(avgmap, m_ref[0], preferred_element_type=jnp.float32)
            + jnp.dot(maxmap, m_ref[1], preferred_element_type=jnp.float32)
            + bias)                                     # (Bt, HW)
    s_attn = jax.nn.sigmoid(conv)                       # (Bt, HW)

    o_ref[...] = (ca * s_attn[:, None, :]).astype(o_ref.dtype)


# -------------------- 7x7 conv as a banded Toeplitz matrix ------------------
def _build_conv_matrix(wconv_flat, H, W):
    """M of shape (2, H*W, H*W) such that conv7x7(maps) == maps[ci] @ M[ci]."""
    wk = wconv_flat.reshape(2, 7, 7).astype(jnp.float32)
    di = jnp.arange(H)[:, None] - jnp.arange(H)[None, :] + 3        # (ih, oh)
    dj = jnp.arange(W)[:, None] - jnp.arange(W)[None, :] + 3        # (iw, ow)
    valid = (((di >= 0) & (di < 7))[:, :, None, None]
             & ((dj >= 0) & (dj < 7))[None, None, :, :])            # (ih,oh,iw,ow)
    m = wk[:, jnp.clip(di, 0, 6)[:, :, None, None],
              jnp.clip(dj, 0, 6)[None, None, :, :]]                 # (2,ih,oh,iw,ow)
    m = jnp.where(valid[None], m, 0.0)
    # -> (ci, ih, iw, oh, ow), flatten input pixel / output pixel indices.
    return m.transpose(0, 1, 3, 2, 4).reshape(2, H * W, H * W)


# --------------------------------- Wrapper ----------------------------------
def cbam_forward(x_nchw, w1, w2, wconv_flat, bias):
    B, C, H, W = x_nchw.shape
    Cr = w1.shape[0]
    HW = H * W
    # Free reshape: H, W are the trailing contiguous dims of NCHW.
    x = x_nchw.reshape(B, C, HW)

    # Pre-transposed tiny MLP weights so the kernel issues plain row-major dots.
    w1t = jnp.asarray(w1, jnp.float32).T                 # (C, Cr)
    w2t = jnp.asarray(w2, jnp.float32).T                 # (Cr, C)
    # TODO(synk): for very large H*W (>~2K) the Toeplitz matrix (2*HW*HW f32)
    # gets too big; switch to a pltpu.roll + lane-mask tap formulation there.
    m = _build_conv_matrix(jnp.asarray(wconv_flat, jnp.float32), H, W)
    bias = jnp.asarray(bias, jnp.float32).reshape(1)

    # Batch-block selection: double-buffered in/out blocks + f32 intermediates
    # + Toeplitz matrix must stay inside ~24 MiB -> safe under v7x's 64 MiB
    # physical VMEM and well under v5e/v6e's 128 MiB (limit raised below).
    itemsize = jnp.dtype(x.dtype).itemsize
    m_bytes = 2 * HW * HW * 4
    per_image = C * HW * (4 * itemsize + 8)
    budget = 24 * 1024 * 1024
    Bt = 1
    for cand in (16, 8, 4, 2, 1):
        if B % cand == 0 and cand * per_image + m_bytes <= budget:
            Bt = cand
            break
    # Keep at least 2 grid steps so the "parallel" batch axis can be sharded
    # across v7x's 2 TensorCores (negligible extra step cost on 1-TC chips).
    while Bt > 1 and B // Bt < 2:
        Bt //= 2

    out = pl.pallas_call(
        _cbam_kernel,
        out_shape=jax.ShapeDtypeStruct((B, C, HW), x.dtype),
        grid_spec=pltpu.PrefetchScalarGridSpec(
            num_scalar_prefetch=0,
            grid=(B // Bt,),
            in_specs=[
                pl.BlockSpec((Bt, C, HW), lambda b: (b, 0, 0)),
                pl.BlockSpec((C, Cr), lambda b: (0, 0)),
                pl.BlockSpec((Cr, C), lambda b: (0, 0)),
                pl.BlockSpec((2, HW, HW), lambda b: (0, 0, 0)),
                pl.BlockSpec(memory_space=pltpu.MemorySpace.SMEM),
            ],
            out_specs=pl.BlockSpec((Bt, C, HW), lambda b: (b, 0, 0)),
        ),
        compiler_params=pltpu.CompilerParams(
            dimension_semantics=("parallel",),
            vmem_limit_bytes=48 * 1024 * 1024),
    )(x, w1t, w2t, m, bias)

    return out.reshape(B, C, H, W)


# ---------------------------- Pure-JAX reference ----------------------------
def cbam_reference(x_nchw, w1, w2, wconv_flat, bias):
    x = x_nchw.astype(jnp.float32)
    avg = jnp.mean(x, axis=(2, 3))                      # (B, C)
    mx = jnp.max(x, axis=(2, 3))                        # (B, C)

    def mlp(v):
        return jnp.maximum(v @ w1.T, 0.0) @ w2.T

    ca = jax.nn.sigmoid(mlp(avg) + mlp(mx))             # (B, C)
    out = x * ca[:, :, None, None]

    avgmap = jnp.mean(out, axis=1, keepdims=True)       # (B, 1, H, W)
    maxmap = jnp.max(out, axis=1, keepdims=True)        # (B, 1, H, W)
    s_in = jnp.concatenate([avgmap, maxmap], axis=1)    # (B, 2, H, W)
    k = wconv_flat.reshape(1, 2, 7, 7)                  # OIHW
    conv = jax.lax.conv_general_dilated(
        s_in, k, window_strides=(1, 1), padding=((3, 3), (3, 3)),
        dimension_numbers=("NCHW", "OIHW", "NCHW"))
    sa = jax.nn.sigmoid(conv + bias[0])                 # (B, 1, H, W)
    return out * sa


if __name__ == "__main__":
    B, C, H, W = 2, 32, 16, 16                          # ratio=16 -> Cr=2
    Cr = C // 16

    key = jax.random.PRNGKey(0)
    kx, k1, k2, k3 = jax.random.split(key, 4)
    x = jax.random.normal(kx, (B, C, H, W), dtype=jnp.float32)
    w1 = jax.random.normal(k1, (Cr, C), dtype=jnp.float32) * 0.1
    w2 = jax.random.normal(k2, (C, Cr), dtype=jnp.float32) * 0.1
    wconv = jax.random.normal(k3, (2 * 7 * 7,), dtype=jnp.float32) * 0.1
    bias = jnp.array([0.05], dtype=jnp.float32)

    out = jax.jit(cbam_forward)(x, w1, w2, wconv, bias)
    out = jax.block_until_ready(out)

    ref = cbam_reference(x, w1, w2, wconv, bias)
    assert out.shape == (B, C, H, W)
    # Tolerance allows for f32 MXU matmul rounding (multi-pass accumulation)
    # while still catching any structural / orientation / bias errors.
    if not jnp.allclose(out, ref, atol=2e-3, rtol=2e-3):
        err = float(jnp.max(jnp.abs(out - ref)))
        raise AssertionError(
            f"Pallas CBAM output mismatch vs JAX reference (max |err| = {err})")

    print("KERNEL_OK")
</pallas_src>

<mosaic_0001>
module attributes {stable_mosaic.version = 11 : i64} {
  func.func @_cbam_kernel(%arg0: i32, %arg1: memref<1x32x256xf32, #tpu.memory_space<vmem>>, %arg2: memref<32x2xf32, #tpu.memory_space<vmem>>, %arg3: memref<2x32xf32, #tpu.memory_space<vmem>>, %arg4: memref<2x256x256xf32, #tpu.memory_space<vmem>>, %arg5: memref<1xf32, #tpu.memory_space<smem>>, %arg6: memref<1x32x256xf32, #tpu.memory_space<vmem>>) attributes {dimension_semantics = [#tpu.dimension_semantics<parallel>], iteration_bounds = array<i64: 2>, scalar_prefetch = 0 : i64, scratch_operands = 0 : i64, tpu.core_type = #tpu.core_type<tc>, window_params = [{transform_indices = @transform_0, window_bounds = array<i64: 1, 32, 256>}, {pipeline_mode = #tpu.pipeline_mode<synchronous>, transform_indices = @transform_1, window_bounds = array<i64: 32, 2>}, {pipeline_mode = #tpu.pipeline_mode<synchronous>, transform_indices = @transform_2, window_bounds = array<i64: 2, 32>}, {pipeline_mode = #tpu.pipeline_mode<synchronous>, transform_indices = @transform_3, window_bounds = array<i64: 2, 256, 256>}, {transform_indices = @transform_4, window_bounds = array<i64: 1>}, {transform_indices = @transform_5, window_bounds = array<i64: 1, 32, 256>}]} {
    %c0 = arith.constant 0 : index
    %0 = memref.load %arg5[%c0] : memref<1xf32, #tpu.memory_space<smem>>
    %c0_0 = arith.constant 0 : index
    %c0_1 = arith.constant 0 : index
    %1 = vector.load %arg2[%c0_0, %c0_1] : memref<32x2xf32, #tpu.memory_space<vmem>>, vector<32x2xf32>
    %c0_2 = arith.constant 0 : index
    %c0_3 = arith.constant 0 : index
    %2 = vector.load %arg3[%c0_2, %c0_3] : memref<2x32xf32, #tpu.memory_space<vmem>>, vector<2x32xf32>
    %c0_4 = arith.constant 0 : index
    %c0_5 = arith.constant 0 : index
    %c0_6 = arith.constant 0 : index
    %3 = vector.load %arg1[%c0_4, %c0_5, %c0_6] : memref<1x32x256xf32, #tpu.memory_space<vmem>>, vector<1x32x256xf32>
    %cst = arith.constant dense<0.000000e+00> : vector<1x32xf32>
    %4 = vector.multi_reduction <add>, %3, %cst [2] : vector<1x32x256xf32> to vector<1x32xf32>
    %cst_7 = arith.constant 2.560000e+02 : f32
    %5 = vector.broadcast %cst_7 : f32 to vector<1x32xf32>
    %6 = arith.divf %4, %5 : vector<1x32xf32>
    %cst_8 = arith.constant dense<0xFF800000> : vector<1x32xf32>
    %7 = vector.multi_reduction <maximumf>, %3, %cst_8 [2] : vector<1x32x256xf32> to vector<1x32xf32>
    %cst_9 = arith.constant dense<0.000000e+00> : vector<1x2xf32>
    %8 = tpu.matmul %6, %1, %cst_9 {dimension_numbers = #tpu.dot_dimension_numbers<[1], [0], [0], [1], [0, 0, 1, 1], [], []>} : vector<1x32xf32>, vector<32x2xf32>, vector<1x2xf32> -> vector<1x2xf32>
    %cst_10 = arith.constant 0.000000e+00 : f32
    %9 = vector.broadcast %cst_10 : f32 to vector<1x2xf32>
    %10 = arith.maximumf %8, %9 : vector<1x2xf32>
    %cst_11 = arith.constant dense<0.000000e+00> : vector<1x32xf32>
    %11 = tpu.matmul %10, %2, %cst_11 {dimension_numbers = #tpu.dot_dimension_numbers<[1], [0], [0], [1], [0, 0, 1, 1], [], []>} : vector<1x2xf32>, vector<2x32xf32>, vector<1x32xf32> -> vector<1x32xf32>
    %cst_12 = arith.constant dense<0.000000e+00> : vector<1x2xf32>
    %12 = tpu.matmul %7, %1, %cst_12 {dimension_numbers = #tpu.dot_dimension_numbers<[1], [0], [0], [1], [0, 0, 1, 1], [], []>} : vector<1x32xf32>, vector<32x2xf32>, vector<1x2xf32> -> vector<1x2xf32>
    %cst_13 = arith.constant 0.000000e+00 : f32
    %13 = vector.broadcast %cst_13 : f32 to vector<1x2xf32>
    %14 = arith.maximumf %12, %13 : vector<1x2xf32>
    %cst_14 = arith.constant dense<0.000000e+00> : vector<1x32xf32>
    %15 = tpu.matmul %14, %2, %cst_14 {dimension_numbers = #tpu.dot_dimension_numbers<[1], [0], [0], [1], [0, 0, 1, 1], [], []>} : vector<1x2xf32>, vector<2x32xf32>, vector<1x32xf32> -> vector<1x32xf32>
    %16 = arith.addf %11, %15 : vector<1x32xf32>
    %17 = arith.negf %16 : vector<1x32xf32>
    %18 = math.exp %17 : vector<1x32xf32>
    %cst_15 = arith.constant 1.000000e+00 : f32
    %19 = vector.broadcast %cst_15 : f32 to vector<1x32xf32>
    %20 = arith.addf %19, %18 : vector<1x32xf32>
    %21 = arith.divf %19, %20 : vector<1x32xf32>
    %22 = vector.shape_cast %21 : vector<1x32xf32> to vector<1x32x1xf32>
    %23 = vector.broadcast %22 : vector<1x32x1xf32> to vector<1x32x256xf32>
    %24 = arith.mulf %3, %23 : vector<1x32x256xf32>
    %cst_16 = arith.constant dense<0.000000e+00> : vector<1x256xf32>
    %25 = vector.multi_reduction <add>, %24, %cst_16 [1] : vector<1x32x256xf32> to vector<1x256xf32>
    %cst_17 = arith.constant 3.200000e+01 : f32
    %26 = vector.broadcast %cst_17 : f32 to vector<1x256xf32>
    %27 = arith.divf %25, %26 : vector<1x256xf32>
    %cst_18 = arith.constant dense<0xFF800000> : vector<1x256xf32>
    %28 = vector.multi_reduction <maximumf>, %24, %cst_18 [1] : vector<1x32x256xf32> to vector<1x256xf32>
    %c0_19 = arith.constant 0 : index
    %c0_20 = arith.constant 0 : index
    %c0_21 = arith.constant 0 : index
    %29 = vector.load %arg4[%c0_19, %c0_20, %c0_21] : memref<2x256x256xf32, #tpu.memory_space<vmem>>, vector<1x256x256xf32>
    %30 = vector.shape_cast %29 : vector<1x256x256xf32> to vector<256x256xf32>
    %cst_22 = arith.constant dense<0.000000e+00> : vector<1x256xf32>
    %31 = tpu.matmul %27, %30, %cst_22 {dimension_numbers = #tpu.dot_dimension_numbers<[1], [0], [0], [1], [0, 0, 1, 1], [], []>} : vector<1x256xf32>, vector<256x256xf32>, vector<1x256xf32> -> vector<1x256xf32>
    %c1 = arith.constant 1 : index
    %c0_23 = arith.constant 0 : index
    %c0_24 = arith.constant 0 : index
    %32 = vector.load %arg4[%c1, %c0_23, %c0_24] : memref<2x256x256xf32, #tpu.memory_space<vmem>>, vector<1x256x256xf32>
    %33 = vector.shape_cast %32 : vector<1x256x256xf32> to vector<256x256xf32>
    %cst_25 = arith.constant dense<0.000000e+00> : vector<1x256xf32>
    %34 = tpu.matmul %28, %33, %cst_25 {dimension_numbers = #tpu.dot_dimension_numbers<[1], [0], [0], [1], [0, 0, 1, 1], [], []>} : vector<1x256xf32>, vector<256x256xf32>, vector<1x256xf32> -> vector<1x256xf32>
    %35 = arith.addf %31, %34 : vector<1x256xf32>
    %36 = vector.broadcast %0 : f32 to vector<1x256xf32>
    %37 = arith.addf %35, %36 : vector<1x256xf32>
    %38 = arith.negf %37 : vector<1x256xf32>
    %39 = math.exp %38 : vector<1x256xf32>
    %cst_26 = arith.constant 1.000000e+00 : f32
    %40 = vector.broadcast %cst_26 : f32 to vector<1x256xf32>
    %41 = arith.addf %40, %39 : vector<1x256xf32>
    %42 = arith.divf %40, %41 : vector<1x256xf32>
    %43 = vector.shape_cast %42 : vector<1x256xf32> to vector<1x1x256xf32>
    %44 = vector.broadcast %43 : vector<1x1x256xf32> to vector<1x32x256xf32>
    %45 = arith.mulf %24, %44 : vector<1x32x256xf32>
    %c0_27 = arith.constant 0 : index
    %c0_28 = arith.constant 0 : index
    %c0_29 = arith.constant 0 : index
    %46 = vector.load %arg6[%c0_27, %c0_28, %c0_29] : memref<1x32x256xf32, #tpu.memory_space<vmem>>, vector<1x32x256xf32>
    tpu.vector_store %arg6[%c0_27, %c0_28, %c0_29], %45 {strides = array<i32>} : memref<1x32x256xf32, #tpu.memory_space<vmem>>, vector<1x32x256xf32>,
    return
  }
  func.func @transform_0(%arg0: i32) -> (i32, i32, i32) {
    %c0_i32 = arith.constant 0 : i32
    %c0_i32_0 = arith.constant 0 : i32
    %c0_i32_1 = arith.constant 0 : i32
    return %arg0, %c0_i32, %c0_i32_0 : i32, i32, i32
  }
  func.func @transform_1(%arg0: i32) -> (i32, i32) {
    %c0_i32 = arith.constant 0 : i32
    %c0_i32_0 = arith.constant 0 : i32
    %c0_i32_1 = arith.constant 0 : i32
    return %c0_i32, %c0_i32_0 : i32, i32
  }
  func.func @transform_2(%arg0: i32) -> (i32, i32) {
    %c0_i32 = arith.constant 0 : i32
    %c0_i32_0 = arith.constant 0 : i32
    %c0_i32_1 = arith.constant 0 : i32
    return %c0_i32, %c0_i32_0 : i32, i32
  }
  func.func @transform_3(%arg0: i32) -> (i32, i32, i32) {
    %c0_i32 = arith.constant 0 : i32
    %c0_i32_0 = arith.constant 0 : i32
    %c0_i32_1 = arith.constant 0 : i32
    %c0_i32_2 = arith.constant 0 : i32
    return %c0_i32, %c0_i32_0, %c0_i32_1 : i32, i32, i32
  }
  func.func @transform_4(%arg0: i32) -> i32 {
    %c0_i32 = arith.constant 0 : i32
    %c0_i32_0 = arith.constant 0 : i32
    return %c0_i32 : i32
  }
  func.func @transform_5(%arg0: i32) -> (i32, i32, i32) {
    %c0_i32 = arith.constant 0 : i32
    %c0_i32_0 = arith.constant 0 : i32
    %c0_i32_1 = arith.constant 0 : i32
    return %arg0, %c0_i32, %c0_i32_0 : i32, i32, i32
  }
}

</mosaic_0001>

<bundles_post_ra>
// kernel: cbam_forward.1
= control target key start
LH: loop header
LB: loop body
LE: loop exit
PB: predicated region body
PF: predicated region fallthrough
CT: control target
= control target key end

     0   :  { %s1063_s20 = smov 0   ;;  %s1575_s0 = inlined_call_operand.vmem [shape: f32[2,32,256], index: 0, kind: input, shape index: {}]   ;;  %s1576_s1 = inlined_call_operand.vmem [shape: f32[32,2], index: 1, kind: input, shape index: {}]   ;;  %s1577_s2 = inlined_call_operand.vmem [shape: f32[2,32], index: 2, kind: input, shape index: {}]   ;;  %s1578_s3 = inlined_call_operand.vmem [shape: f32[2,256,256], index: 3, kind: input, shape index: {}]   ;;  %s1579_s4 = inlined_call_operand.<no memory space> [shape: f32[1], index: 4, kind: input, shape index: {}]   ;;  %s1580_s5 = inlined_call_operand.vmem [shape: f32[2,32,256], index: 5, kind: output, shape index: {}]  }
   0x1   :  { %10 = sst [smem:[#allocation2]] %s1579_s4 }
   0x2 LB: > { %s903_s21 = sadd.s32 4294967295, %s1026_s20   ;;  %p907_p0 = scmp.ge.s32.totalorder %s1026_s20, 1  ;;  %s1026_s20 = sphi %s1063_s20, %s16_s20  }
   0x3   : > { %p188_p1 = scmp.lt.s32.totalorder %s1026_s20, 3 }
   0x5   : > { %p189_p2 = pnand %p907_p0, %p188_p1 }
   0x6   : > { %p216_p3 = scmp.lt.s32.totalorder (!%p189_p2), %s903_s21, 1  ;;  %s226_s13 = sld [smem:[#allocation2]] (!%p189_p2) }
   0x7   : > { %192 = sbr.rel (%p189_p2) target bundleno = 762 (0x2fa), region = 40 }
   0xc   : > { %s1582_s21 = smov (!%p216_p3, %s903_s21), 1  ;;  %v230_v16 = vld [vmem:[%s1576_s1 + $0x18] sm:$0xff]  ;;  %v229_v17 = vld [vmem:[%s1576_s1 + $0x10] sm:$0xff]  ;;  %v1028_v18 = vmov 256.0   ;;  %v228_v19 = vld [vmem:[%s1576_s1 + $0x8] sm:$0xff]  ;;  %v279_v25 = vlaneseq  ;;  %vm288_vm1 = vcmask 195712  }
   0xd   : > { %s987_s4 = sshll.u32 %s1582_s21, 6  ;;  %309 = vmatpush.msra.mxu0 %v230_v16  ;;  %343 = vmatpush.msra.mxu1 %v230_v16  ;;  %1004 = vrcp.f32 %v1028_v18  ;;  %v227_v20 = vld [vmem:[%s1576_s1] sm:$0xff]  ;;  %vm284_vm2 = vcmask 130112   ;;  %vm292_vm3 = vcmask 261312   ;;  %vm294_vm4 = vcmask 261120   ;;  %v949_v16 = vld [vmem:[%s1578_s3 + $0x2f0] sm:$0xff] }
   0xe   : > { %s220_s24 = scalar_lea.vmem %s1575_s0, %s987_s4  ;;  %v280_v30 = vand.u32 127, %v279_v25  ;;  %v231_v58 = vld [vmem:[%s1577_s2] sm:$0x3]  ;;  %vm356_vm5 = vcmask 1041408   ;;  %vm352_vm6 = vcmask 15360   ;;  %v1128_v63 = vshrl.u32 %v279_v25, 7  ;;  %s225_s16 = scalar_lea.vmem %s1580_s5, %s987_s4 }
   0xf   : > { %v1079_v0 = vld [vmem:[%s220_s24] sm:$0xff]  ;;  %v1081_v1 = vld [vmem:[%s220_s24 + $0x8] sm:$0xff]  ;;  %v1093_v7 = vld [vmem:[%s220_s24 + $0x10] sm:$0xff]  ;;  %310 = vmatpush.msra.mxu0 %v229_v17  ;;  %344 = vmatpush.msra.mxu1 %v229_v17 }
  0x10   : > { %v1083_v2 = vld [vmem:[%s220_s24 + $0x20] sm:$0xff]  ;;  %v263_v3 = vmax.f32 %v1079_v0, %v1081_v1  ;;  %v240_v4 = vadd.f32 %v1081_v1, %v1079_v0  ;;  %v1089_v5 = vld [vmem:[%s220_s24 + $0x28] sm:$0xff]  ;;  %v1095_v8 = vld [vmem:[%s220_s24 + $0x18] sm:$0xff]  ;;  %v286_v33 = vadd.s32 4294967280, %v280_v30  ;;  %v290_v36 = vadd.s32 4294967272, %v280_v30  ;;  %916 = vmatpush.msk.msra.mxu3 %vm356_vm5, %v231_v58  ;;  %914 = vmatpush.msk.msra.mxu2 %vm356_vm5, %v231_v58 }
  0x11   : > { %v246_v6 = vadd.f32 %v1089_v5, %v1083_v2  ;;  %v1097_v9 = vld [vmem:[%s220_s24 + $0x30] sm:$0xff]  ;;  %v1099_v10 = vld [vmem:[%s220_s24 + $0x38] sm:$0xff]  ;;  %v266_v11 = vmax.f32 %v1093_v7, %v1095_v8  ;;  %v243_v12 = vadd.f32 %v1095_v8, %v1093_v7  ;;  %v269_v14 = vmax.f32 %v1083_v2, %v1089_v5  ;;  %311 = vmatpush.msra.mxu0 %v228_v19  ;;  %v936_v58 = vld [vmem:[%s1578_s3 + $0x288] sm:$0xff] }
  0x12   : > { %264 = vmax.xlane.f32.xlu2 %v263_v3  ;;  %241 = vadd.xlane.f32.xlu0 %v240_v4  ;;  %v249_v13 = vadd.f32 %v1099_v10, %v1097_v9  ;;  %v272_v15 = vmax.f32 %v1097_v9, %v1099_v10  ;;  %v282_v37 = vadd.s32 4294967288, %v280_v30  ;;  %v437_v3 = vadd.s32 16, %v1128_v63  ;;  %v981_v17 = vld [vmem:[%s1578_s3 + $0x3f0] sm:$0xff]  ;;  %v950_v18 = vld [vmem:[%s1578_s3 + $0x2f8] sm:$0xff] }
  0x13   : > { %247 = vadd.xlane.f32.xlu1 %v246_v6  ;;  %345 = vmatpush.msra.mxu1 %v228_v19  ;;  %v1005_v21 = vpop.eup %1004  ;;  %v431_v4 = vadd.s32 8, %v1128_v63  ;;  %v982_v19 = vld [vmem:[%s1578_s3 + $0x3f8] sm:$0xff]  ;;  %v945_v25 = vld [vmem:[%s1578_s3 + $0x2d0] sm:$0xff] }
  0x14   : > { %312 = vmatpush.msra.mxu0 %v227_v20  ;;  %v253_v22 = vmul.f32 256.0, %v1005_v21  ;;  %vm257_vm0 = vweird.f32 %v1005_v21  ;;  %999 = vset.pattern.permute.xlu2 %v1128_v63 }
  0x15   : > { %346 = vmatpush.msra.mxu1 %v227_v20  ;;  %1001 = vset.pattern.permute.xlu1 %v437_v3  ;;  %v947_v20 = vld [vmem:[%s1578_s3 + $0x2e0] sm:$0xff] }
  0x16   : > { %v254_v23 = vsub.f32 1.0, %v253_v22  ;;  %1000 = vset.pattern.permute.xlu0 %v431_v4  ;;  %629 = vmatpush.msrb.mxu2 %v949_v16  ;;  %v931_v3 = vld [vmem:[%s1578_s3 + $0x260] sm:$0xff] }
  0x17   : > { %649 = vmatpush.msrb.mxu3 %v981_v17  ;;  %669 = vmatpush.msrb.mxu0 %v950_v18  ;;  %v963_v4 = vld [vmem:[%s1578_s3 + $0x360] sm:$0xff]  ;;  %v928_v18 = vld [vmem:[%s1578_s3 + $0x248] sm:$0xff] }
  0x18   : > { %v255_v24 = vmul.f32 %v1005_v21, %v254_v23  ;;  %689 = vmatpush.msrb.mxu1 %v982_v19  ;;  %v948_v23 = vld [vmem:[%s1578_s3 + $0x2e8] sm:$0xff]  ;;  %630 = vmatpush.msrb.mxu2 %v947_v20  ;;  %v927_v16 = vld [vmem:[%s1578_s3 + $0x240] sm:$0xff]  ;;  %v925_v20 = vld [vmem:[%s1578_s3 + $0x230] sm:$0xff] }
  0x19   : > { %670 = vmatpush.msrb.mxu0 %v948_v23  ;;  %v959_v17 = vld [vmem:[%s1578_s3 + $0x340] sm:$0xff]  ;;  %v960_v19 = vld [vmem:[%s1578_s3 + $0x348] sm:$0xff]  ;;  %v958_v23 = vld [vmem:[%s1578_s3 + $0x338] sm:$0xff] }
  0x1a   : > { %267 = vmax.xlane.f32.xlu2 %v266_v11  ;;  %244 = vadd.xlane.f32.xlu0 %v243_v12  ;;  %v256_v26 = vadd.f32 %v1005_v21, %v255_v24  ;;  %v980_v24 = vld [vmem:[%s1578_s3 + $0x3e8] sm:$0xff] }
  0x1b   : > { %250 = vadd.xlane.f32.xlu1 %v249_v13  ;;  %690 = vmatpush.msrb.mxu1 %v980_v24  ;;  %v923_v24 = vld [vmem:[%s1578_s3 + $0x220] sm:$0xff] }
  0x1c   : > { %v258_v31 = vsel %vm257_vm0, %v1005_v21, %v256_v26  ;;  %v979_v21 = vld [vmem:[%s1578_s3 + $0x3e0] sm:$0xff]  ;;  %631 = vmatpush.msrb.mxu2 %v945_v25 }
  0x1d   : > { %650 = vmatpush.msrb.mxu3 %v979_v21  ;;  %v957_v21 = vld [vmem:[%s1578_s3 + $0x330] sm:$0xff]  ;;  %v955_v25 = vld [vmem:[%s1578_s3 + $0x320] sm:$0xff] }
  0x22   : > { %270 = vmax.xlane.f32.xlu0 %v269_v14 }
  0x23   : > { %273 = vmax.xlane.f32.xlu1 %v272_v15 }
  0x85   : > { %v242_v27 = vpop.xlane.xlu0 %241  ;;  %v265_v28 = vpop.xlane.xlu2 %264 }
  0x86   : > { %v248_v29 = vpop.xlane.xlu1 %247  ;;  %v259_v32 = vmul.f32 %v258_v31, %v242_v27  ;;  %v322_v47 = vperm.slane %v265_v28, %v280_v30  ;;  %v977_v27 = vld [vmem:[%s1578_s3 + $0x3d0] sm:$0xff]  ;;  %v946_v28 = vld [vmem:[%s1578_s3 + $0x2d8] sm:$0xff] }
  0x87   : > { %v261_v34 = vmul.f32 %v258_v31, %v248_v29  ;;  %v978_v29 = vld [vmem:[%s1578_s3 + $0x3d8] sm:$0xff]  ;;  %651 = vmatpush.msrb.mxu3 %v977_v27  ;;  %671 = vmatpush.msrb.mxu0 %v946_v28  ;;  %v956_v27 = vld [vmem:[%s1578_s3 + $0x328] sm:$0xff]  ;;  %v921_v28 = vld [vmem:[%s1578_s3 + $0x210] sm:$0xff] }
  0x88   : > { %v281_v41 = vperm.slane %v259_v32, %v280_v30  ;;  %v943_v30 = vld [vmem:[%s1578_s3 + $0x2c0] sm:$0xff]  ;;  %691 = vmatpush.msrb.mxu1 %v978_v29  ;;  %v953_v29 = vld [vmem:[%s1578_s3 + $0x310] sm:$0xff] }
  0x89   : > { %v287_v44 = vperm.slane %v261_v34, %v286_v33  ;;  %v976_v34 = vld [vmem:[%s1578_s3 + $0x3c8] sm:$0xff]  ;;  %632 = vmatpush.msrb.mxu2 %v943_v30  ;;  %v922_v30 = vld [vmem:[%s1578_s3 + $0x218] sm:$0xff] }
  0x8a   : > { %692 = vmatpush.msrb.mxu1 %v976_v34  ;;  %v920_v34 = vld [vmem:[%s1578_s3 + $0x208] sm:$0xff] }
  0x8d   : > { %v245_v35 = vpop.xlane.xlu0 %244  ;;  %v268_v42 = vpop.xlane.xlu2 %267 }
  0x8e   : > { %v260_v38 = vmul.f32 %v258_v31, %v245_v35  ;;  %v251_v39 = vpop.xlane.xlu1 %250  ;;  %v323_v48 = vperm.slane %v268_v42, %v282_v37  ;;  %v939_v42 = vld [vmem:[%s1578_s3 + $0x2a0] sm:$0xff] }
  0x8f   : > { %v262_v40 = vmul.f32 %v258_v31, %v251_v39  ;;  %v975_v31 = vld [vmem:[%s1578_s3 + $0x3c0] sm:$0xff] }
  0x90   : > { %v283_v43 = vperm.slane %v260_v38, %v282_v37  ;;  %v324_v54 = vsel %vm284_vm2, %v323_v48, %v322_v47  ;;  %v973_v37 = vld [vmem:[%s1578_s3 + $0x3b0] sm:$0xff]  ;;  %652 = vmatpush.msrb.mxu3 %v975_v31  ;;  %v954_v31 = vld [vmem:[%s1578_s3 + $0x318] sm:$0xff] }
  0x91   : > { %v291_v45 = vperm.slane %v262_v40, %v290_v36  ;;  %v942_v40 = vld [vmem:[%s1578_s3 + $0x2b8] sm:$0xff] }
  0x92   : > { %v285_v46 = vsel %vm284_vm2, %v283_v43, %v281_v41  ;;  %v974_v41 = vld [vmem:[%s1578_s3 + $0x3b8] sm:$0xff]  ;;  %v971_v43 = vld [vmem:[%s1578_s3 + $0x3a0] sm:$0xff]  ;;  %653 = vmatpush.msrb.mxu3 %v973_v37  ;;  %v562_v37 = vld [vmem:[%s1578_s3 + $0x1f0] sm:$0xff] }
  0x93   : > { %v289_v49 = vsel %vm288_vm1, %v287_v44, %v285_v46  ;;  %v972_v46 = vld [vmem:[%s1578_s3 + $0x3a8] sm:$0xff]  ;;  %693 = vmatpush.msrb.mxu1 %v974_v41  ;;  %v560_v41 = vld [vmem:[%s1578_s3 + $0x1e0] sm:$0xff] }
  0x94   : > { %v293_v50 = vsel %vm292_vm3, %v291_v45, %v289_v49  ;;  %v940_v45 = vld [vmem:[%s1578_s3 + $0x2a8] sm:$0xff]  ;;  %654 = vmatpush.msrb.mxu3 %v971_v43 }
  0x95   : > { %912 = vmatmul.msk.f32.vlgmr.msra.gmra.mxu0 %vm294_vm4, %v293_v50  ;;  %v271_v51 = vpop.xlane.xlu0 %270  ;;  %694 = vmatpush.msrb.mxu1 %v972_v46  ;;  %v561_v43 = vld [vmem:[%s1578_s3 + $0x1e8] sm:$0xff]  ;;  %v527_v46 = vld [vmem:[%s1578_s3 + $0xd8] sm:$0xff] }
  0x96   : > { %v325_v52 = vperm.slane %v271_v51, %v286_v33  ;;  %v274_v53 = vpop.xlane.xlu1 %273  ;;  %v944_v33 = vld [vmem:[%s1578_s3 + $0x2c8] sm:$0xff]  ;;  %v443_v51 = vadd.s32 24, %v1128_v63  ;;  %v966_v63 = vld [vmem:[%s1578_s3 + $0x378] sm:$0xff] }
  0x97   : > { %v327_v55 = vperm.slane %v274_v53, %v290_v36  ;;  %v941_v36 = vld [vmem:[%s1578_s3 + $0x2b0] sm:$0xff]  ;;  %672 = vmatpush.msrb.mxu0 %v944_v33  ;;  %v951_v33 = vld [vmem:[%s1578_s3 + $0x300] sm:$0xff] }
  0x98   : > { %v326_v56 = vsel %vm288_vm1, %v325_v52, %v324_v54  ;;  %633 = vmatpush.msrb.mxu2 %v941_v36  ;;  %v937_v52 = vld [vmem:[%s1578_s3 + $0x290] sm:$0xff]  ;;  %v938_v54 = vld [vmem:[%s1578_s3 + $0x298] sm:$0xff] }
  0x99   : > { %v328_v57 = vsel %vm292_vm3, %v327_v55, %v326_v56  ;;  %673 = vmatpush.msrb.mxu0 %v942_v40  ;;  %v969_v53 = vld [vmem:[%s1578_s3 + $0x390] sm:$0xff]  ;;  %v970_v55 = vld [vmem:[%s1578_s3 + $0x398] sm:$0xff]  ;;  %v935_v56 = vld [vmem:[%s1578_s3 + $0x280] sm:$0xff] }
  0x9a   : > { %913 = vmatmul.msk.f32.vlgmr.msra.gmra.mxu1 %vm294_vm4, %v328_v57  ;;  %634 = vmatpush.msrb.mxu2 %v939_v42  ;;  %v967_v57 = vld [vmem:[%s1578_s3 + $0x380] sm:$0xff]  ;;  %v530_v36 = vld [vmem:[%s1578_s3 + $0xf0] sm:$0xff]  ;;  %v529_v42 = vld [vmem:[%s1578_s3 + $0xe8] sm:$0xff] }
  0x9b   : > { %674 = vmatpush.msrb.mxu0 %v940_v45  ;;  %655 = vmatpush.msrb.mxu3 %v969_v53  ;;  %v528_v40 = vld [vmem:[%s1578_s3 + $0xe0] sm:$0xff]  ;;  %v558_v45 = vld [vmem:[%s1578_s3 + $0x1d0] sm:$0xff] }
  0x9c   : > { %635 = vmatpush.msrb.mxu2 %v937_v52  ;;  %695 = vmatpush.msrb.mxu1 %v970_v55  ;;  %v522_v52 = vld [vmem:[%s1578_s3 + $0xb0] sm:$0xff]  ;;  %v555_v55 = vld [vmem:[%s1578_s3 + $0x1b8] sm:$0xff] }
  0x9d   : > { %675 = vmatpush.msrb.mxu0 %v938_v54  ;;  %656 = vmatpush.msrb.mxu3 %v967_v57  ;;  %v554_v53 = vld [vmem:[%s1578_s3 + $0x1b0] sm:$0xff]  ;;  %v523_v54 = vld [vmem:[%s1578_s3 + $0xb8] sm:$0xff]  ;;  %v552_v57 = vld [vmem:[%s1578_s3 + $0x1a0] sm:$0xff] }
  0x9e   : > { %636 = vmatpush.msrb.mxu2 %v935_v56  ;;  %v520_v56 = vld [vmem:[%s1578_s3 + $0xa0] sm:$0xff] }
  0x9f   : > { %676 = vmatpush.msrb.mxu0 %v936_v58  ;;  %v521_v58 = vld [vmem:[%s1578_s3 + $0xa8] sm:$0xff] }
 0x112   : > { %v314_v59 = vpop.f32.mrf.mxu0 }
 0x113   : > { %v317_v60 = vmax.f32 %v314_v59, 0.0  ;;  %v968_v59 = vld [vmem:[%s1578_s3 + $0x388] sm:$0xff] }
 0x114   : > { %696 = vmatpush.msrb.mxu1 %v968_v59  ;;  %v553_v59 = vld [vmem:[%s1578_s3 + $0x1a8] sm:$0xff] }
 0x115   : > { %917 = vmatmul.msk.f32.vlgmr.msra.gmra.mxu3 %vm352_vm6, %v317_v60  ;;  %v933_v60 = vld [vmem:[%s1578_s3 + $0x270] sm:$0xff] }
 0x116   : > { %637 = vmatpush.msrb.mxu2 %v933_v60  ;;  %697 = vmatpush.msrb.mxu1 %v966_v63  ;;  %v518_v60 = vld [vmem:[%s1578_s3 + $0x90] sm:$0xff]  ;;  %v551_v63 = vld [vmem:[%s1578_s3 + $0x198] sm:$0xff] }
 0x117   : > { %v348_v61 = vpop.f32.mrf.mxu1 }
 0x118   : > { %v351_v62 = vmax.f32 %v348_v61, 0.0  ;;  %v965_v61 = vld [vmem:[%s1578_s3 + $0x370] sm:$0xff]  ;;  %638 = vmatpush.msrb.mxu2 %v931_v3  ;;  %v516_v3 = vld [vmem:[%s1578_s3 + $0x80] sm:$0xff] }
 0x119   : > { %657 = vmatpush.msrb.mxu3 %v965_v61  ;;  %v550_v61 = vld [vmem:[%s1578_s3 + $0x190] sm:$0xff] }
 0x11a   : > { %915 = vmatmul.msk.f32.vlgmr.msra.gmra.mxu2 %vm352_vm6, %v351_v62  ;;  %v934_v62 = vld [vmem:[%s1578_s3 + $0x278] sm:$0xff] }
 0x11b   : > { %677 = vmatpush.msrb.mxu0 %v934_v62  ;;  %658 = vmatpush.msrb.mxu3 %v963_v4  ;;  %v519_v62 = vld [vmem:[%s1578_s3 + $0x98] sm:$0xff]  ;;  %v548_v4 = vld [vmem:[%s1578_s3 + $0x180] sm:$0xff] }
 0x198   : > { %v400_v6 = vpop.f32.mrf.mxu3 }
 0x19d   : > { %v377_v11 = vpop.f32.mrf.mxu2 }
 0x19e   : > { %v401_v12 = vadd.f32 %v400_v6, %v377_v11  ;;  %v932_v6 = vld [vmem:[%s1578_s3 + $0x268] sm:$0xff] }
 0x19f   : > { %v964_v11 = vld [vmem:[%s1578_s3 + $0x368] sm:$0xff]  ;;  %678 = vmatpush.msrb.mxu0 %v932_v6 }
 0x1a0   : > { %v918_v13 = vmul.f32 -1.442695, %v401_v12  ;;  %v929_v12 = vld [vmem:[%s1578_s3 + $0x250] sm:$0xff]  ;;  %698 = vmatpush.msrb.mxu1 %v964_v11  ;;  %v517_v6 = vld [vmem:[%s1578_s3 + $0x88] sm:$0xff] }
 0x1a1   : > { %639 = vmatpush.msrb.mxu2 %v929_v12  ;;  %v549_v11 = vld [vmem:[%s1578_s3 + $0x188] sm:$0xff]  ;;  %v514_v12 = vld [vmem:[%s1578_s3 + $0x70] sm:$0xff] }
 0x1a2   : > { %1006 = vpow2.f32 %v918_v13  ;;  %v961_v13 = vld [vmem:[%s1578_s3 + $0x350] sm:$0xff] }
 0x1a3   : > { %659 = vmatpush.msrb.mxu3 %v961_v13  ;;  %640 = vmatpush.msrb.mxu2 %v927_v16  ;;  %v546_v13 = vld [vmem:[%s1578_s3 + $0x170] sm:$0xff]  ;;  %v512_v16 = vld [vmem:[%s1578_s3 + $0x60] sm:$0xff] }
 0x1a5   : > { %660 = vmatpush.msrb.mxu3 %v959_v17  ;;  %641 = vmatpush.msrb.mxu2 %v925_v20  ;;  %v544_v17 = vld [vmem:[%s1578_s3 + $0x160] sm:$0xff]  ;;  %v510_v20 = vld [vmem:[%s1578_s3 + $0x50] sm:$0xff] }
 0x1a7   : > { %661 = vmatpush.msrb.mxu3 %v957_v21  ;;  %642 = vmatpush.msrb.mxu2 %v923_v24  ;;  %v542_v21 = vld [vmem:[%s1578_s3 + $0x150] sm:$0xff]  ;;  %v508_v24 = vld [vmem:[%s1578_s3 + $0x40] sm:$0xff] }
 0x1a8   : > { %v1007_v14 = vpop.eup %1006 }
 0x1a9   : > { %v406_v15 = vadd.f32 1.0, %v1007_v14  ;;  %v930_v14 = vld [vmem:[%s1578_s3 + $0x258] sm:$0xff]  ;;  %662 = vmatpush.msrb.mxu3 %v955_v25  ;;  %643 = vmatpush.msrb.mxu2 %v921_v28  ;;  %v540_v25 = vld [vmem:[%s1578_s3 + $0x140] sm:$0xff]  ;;  %v506_v28 = vld [vmem:[%s1578_s3 + $0x30] sm:$0xff] }
 0x1aa   : > { %679 = vmatpush.msrb.mxu0 %v930_v14  ;;  %v515_v14 = vld [vmem:[%s1578_s3 + $0x78] sm:$0xff] }
 0x1ab   : > { %1008 = vrcp.f32 %v406_v15  ;;  %v418_v35 = vand.u32 2147483648, %v406_v15  ;;  %v416_v39 = vand.u32 2147483647, %v406_v15  ;;  %vm412_vm8 = vweird.f32 %v406_v15  ;;  %663 = vmatpush.msrb.mxu3 %v953_v29  ;;  %v538_v29 = vld [vmem:[%s1578_s3 + $0x130] sm:$0xff] }
 0x1ac   : > { %680 = vmatpush.msrb.mxu0 %v928_v18  ;;  %v513_v18 = vld [vmem:[%s1578_s3 + $0x68] sm:$0xff] }
 0x1ad   : > { %v419_v47 = vor.u32 1.1754944e-38, %v418_v35  ;;  %vm417_vm10 = vcmp.eq.f32.partialorder %v416_v39, 8.507059e+37  ;;  %v952_v35 = vld [vmem:[%s1578_s3 + $0x308] sm:$0xff]  ;;  %664 = vmatpush.msrb.mxu3 %v951_v33  ;;  %v563_v39 = vld [vmem:[%s1578_s3 + $0x1f8] sm:$0xff]  ;;  %v536_v33 = vld [vmem:[%s1578_s3 + $0x120] sm:$0xff] }
 0x1af   : > { %729 = vmatpush.msra.mxu3 %v562_v37  ;;  %v502_v37 = vld [vmem:[%s1578_s3 + $0x10] sm:$0xff] }
 0x1b1   : > { %v1009_v22 = vpop.eup %1008  ;;  %730 = vmatpush.msra.mxu3 %v560_v41  ;;  %v500_v41 = vld [vmem:[%s1578_s3] sm:$0xff] }
 0x1b2   : > { %v408_v26 = vmul.f32 %v1009_v22, %v406_v15  ;;  %vm413_vm7 = vweird.f32 %v1009_v22  ;;  %v962_v15 = vld [vmem:[%s1578_s3 + $0x358] sm:$0xff] }
 0x1b3   : > { %vm414_vm9 = vmor %vm412_vm8, %vm413_vm7  ;;  %699 = vmatpush.msrb.mxu1 %v962_v15  ;;  %731 = vmatpush.msra.mxu3 %v558_v45  ;;  %v547_v15 = vld [vmem:[%s1578_s3 + $0x178] sm:$0xff]  ;;  %v1029_v45 = vmov 32.0  }
 0x1b4   : > { %v409_v32 = vsub.f32 1.0, %v408_v26  ;;  %v924_v26 = vld [vmem:[%s1578_s3 + $0x228] sm:$0xff]  ;;  %1010 = vrcp.f32 %v1029_v45  ;;  %v789_v45 = vstv %s226_s13 }
 0x1b5   : > { %700 = vmatpush.msrb.mxu1 %v960_v19  ;;  %v545_v19 = vld [vmem:[%s1578_s3 + $0x168] sm:$0xff] }
 0x1b6   : > { %v410_v38 = vmul.f32 %v1009_v22, %v409_v32  ;;  %v919_v32 = vld [vmem:[%s1578_s3 + $0x200] sm:$0xff] }
 0x1b7   : > { %701 = vmatpush.msrb.mxu1 %v958_v23  ;;  %644 = vmatpush.msrb.mxu2 %v919_v32  ;;  %v543_v23 = vld [vmem:[%s1578_s3 + $0x158] sm:$0xff]  ;;  %v504_v32 = vld [vmem:[%s1578_s3 + $0x20] sm:$0xff] }
 0x1b8   : > { %v411_v44 = vadd.f32 %v1009_v22, %v410_v38  ;;  %v531_v38 = vld [vmem:[%s1578_s3 + $0xf8] sm:$0xff] }
 0x1b9   : > { %702 = vmatpush.msrb.mxu1 %v956_v27  ;;  %709 = vmatpush.msra.mxu2 %v530_v36  ;;  %v541_v27 = vld [vmem:[%s1578_s3 + $0x148] sm:$0xff] }
 0x1ba   : > { %v415_v48 = vsel %vm414_vm9, %v1009_v22, %v411_v44  ;;  %v926_v22 = vld [vmem:[%s1578_s3 + $0x238] sm:$0xff]  ;;  %v526_v44 = vld [vmem:[%s1578_s3 + $0xd0] sm:$0xff]  ;;  %v537_v36 = vld [vmem:[%s1578_s3 + $0x128] sm:$0xff] }
 0x1bb   : > { %v420_v49 = vsel %vm417_vm10, %v419_v47, %v415_v48  ;;  %681 = vmatpush.msrb.mxu0 %v926_v22  ;;  %703 = vmatpush.msrb.mxu1 %v954_v31  ;;  %v559_v47 = vld [vmem:[%s1578_s3 + $0x1d8] sm:$0xff]  ;;  %v524_v48 = vld [vmem:[%s1578_s3 + $0xc0] sm:$0xff] }
 0x1bc   : > { %v422_v50 = vperm.slane %v420_v49, 0  ;;  %710 = vmatpush.msra.mxu2 %v528_v40  ;;  %v556_v49 = vld [vmem:[%s1578_s3 + $0x1c0] sm:$0xff]  ;;  %v511_v22 = vld [vmem:[%s1578_s3 + $0x58] sm:$0xff] }
 0x1bd   : > { %682 = vmatpush.msrb.mxu0 %v924_v26  ;;  %704 = vmatpush.msrb.mxu1 %v952_v35  ;;  %v509_v26 = vld [vmem:[%s1578_s3 + $0x48] sm:$0xff]  ;;  %v539_v31 = vld [vmem:[%s1578_s3 + $0x138] sm:$0xff] }
 0x1be   : > { %439 = vperm.xlu1 %1001, %v422_v50   ;;  %433 = vperm.xlu0 %1000, %v422_v50   ;;  %v505_v35 = vld [vmem:[%s1578_s3 + $0x28] sm:$0xff]  ;;  %v535_v40 = vld [vmem:[%s1578_s3 + $0x118] sm:$0xff] }
 0x1bf   : > { %427 = vperm.xlu2 %999, %v422_v50   ;;  %683 = vmatpush.msrb.mxu0 %v922_v30  ;;  %v507_v30 = vld [vmem:[%s1578_s3 + $0x38] sm:$0xff] }
 0x1c0   : > { %769 = vmatpush.msra.mxu1 %v563_v39  ;;  %711 = vmatpush.msra.mxu2 %v526_v44  ;;  %v503_v39 = vld [vmem:[%s1578_s3 + $0x18] sm:$0xff]  ;;  %v533_v44 = vld [vmem:[%s1578_s3 + $0x108] sm:$0xff] }
 0x1c1   : > { %684 = vmatpush.msrb.mxu0 %v920_v34  ;;  %732 = vmatpush.msra.mxu3 %v556_v49 }
 0x1c2   : > { %770 = vmatpush.msra.mxu1 %v561_v43  ;;  %712 = vmatpush.msra.mxu2 %v524_v48  ;;  %v501_v43 = vld [vmem:[%s1578_s3 + $0x8] sm:$0xff] }
 0x1c3   : > { %749 = vmatpush.msra.mxu0 %v531_v38  ;;  %733 = vmatpush.msra.mxu3 %v554_v53  ;;  %v534_v38 = vld [vmem:[%s1578_s3 + $0x110] sm:$0xff] }
 0x1c4   : > { %771 = vmatpush.msra.mxu1 %v559_v47  ;;  %713 = vmatpush.msra.mxu2 %v522_v52 }
 0x1c5   : > { %750 = vmatpush.msra.mxu0 %v529_v42  ;;  %734 = vmatpush.msra.mxu3 %v552_v57  ;;  %v532_v42 = vld [vmem:[%s1578_s3 + $0x100] sm:$0xff] }
 0x1c6   : > { %1003 = vset.pattern.permute.xlu0 %v443_v51  ;;  %714 = vmatpush.msra.mxu2 %v520_v56 }
 0x1c7   : > { %1002 = vset.pattern.permute.xlu2 %v443_v51  ;;  %751 = vmatpush.msra.mxu0 %v527_v46  ;;  %v557_v51 = vld [vmem:[%s1578_s3 + $0x1c8] sm:$0xff] }
 0x1c8   : > { %772 = vmatpush.msra.mxu1 %v557_v51  ;;  %715 = vmatpush.msra.mxu2 %v518_v60 }
 0x1c9   : > { %735 = vmatpush.msra.mxu3 %v550_v61 }
 0x1ca   : > { %773 = vmatpush.msra.mxu1 %v555_v55  ;;  %716 = vmatpush.msra.mxu2 %v516_v3 }
 0x1cb   : > { %736 = vmatpush.msra.mxu3 %v548_v4 }
 0x1cc   : > { %774 = vmatpush.msra.mxu1 %v553_v59  ;;  %717 = vmatpush.msra.mxu2 %v514_v12 }
 0x1cd   : > { %737 = vmatpush.msra.mxu3 %v546_v13 }
 0x1ce   : > { %775 = vmatpush.msra.mxu1 %v551_v63  ;;  %718 = vmatpush.msra.mxu2 %v512_v16 }
 0x1cf   : > { %445 = vperm.xlu2 %1002, %v422_v50   ;;  %v525_v50 = vld [vmem:[%s1578_s3 + $0xc8] sm:$0xff]  ;;  %738 = vmatpush.msra.mxu3 %v544_v17 }
 0x1d0   : > { %752 = vmatpush.msra.mxu0 %v525_v50  ;;  %776 = vmatpush.msra.mxu1 %v549_v11 }
 0x1d1   : > { %719 = vmatpush.msra.mxu2 %v510_v20  ;;  %739 = vmatpush.msra.mxu3 %v542_v21 }
 0x1d2   : > { %753 = vmatpush.msra.mxu0 %v523_v54  ;;  %777 = vmatpush.msra.mxu1 %v547_v15 }
 0x1d3   : > { %720 = vmatpush.msra.mxu2 %v508_v24  ;;  %740 = vmatpush.msra.mxu3 %v540_v25 }
 0x1d4   : > { %754 = vmatpush.msra.mxu0 %v521_v58  ;;  %778 = vmatpush.msra.mxu1 %v545_v19 }
 0x1d5   : > { %721 = vmatpush.msra.mxu2 %v506_v28  ;;  %741 = vmatpush.msra.mxu3 %v538_v29 }
 0x1d6   : > { %755 = vmatpush.msra.mxu0 %v519_v62  ;;  %779 = vmatpush.msra.mxu1 %v543_v23 }
 0x1d7   : > { %722 = vmatpush.msra.mxu2 %v504_v32  ;;  %742 = vmatpush.msra.mxu3 %v536_v33 }
 0x1d8   : > { %756 = vmatpush.msra.mxu0 %v517_v6  ;;  %780 = vmatpush.msra.mxu1 %v541_v27 }
 0x1d9   : > { %723 = vmatpush.msra.mxu2 %v502_v37  ;;  %743 = vmatpush.msra.mxu3 %v534_v38 }
 0x1da   : > { %757 = vmatpush.msra.mxu0 %v515_v14  ;;  %781 = vmatpush.msra.mxu1 %v539_v31 }
 0x1db   : > { %724 = vmatpush.msra.mxu2 %v500_v41  ;;  %744 = vmatpush.msra.mxu3 %v532_v42 }
 0x1dc   : > { %758 = vmatpush.msra.mxu0 %v513_v18  ;;  %782 = vmatpush.msra.mxu1 %v537_v36 }
 0x1de   : > { %759 = vmatpush.msra.mxu0 %v511_v22  ;;  %783 = vmatpush.msra.mxu1 %v535_v40 }
 0x1e0   : > { %760 = vmatpush.msra.mxu0 %v509_v26  ;;  %784 = vmatpush.msra.mxu1 %v533_v44 }
 0x1e2   : > { %761 = vmatpush.msra.mxu0 %v507_v30 }
 0x1e4   : > { %762 = vmatpush.msra.mxu0 %v505_v35 }
 0x1e6   : > { %763 = vmatpush.msra.mxu0 %v503_v39 }
 0x1e8   : > { %764 = vmatpush.msra.mxu0 %v501_v43 }
 0x219   : > { %v428_v34 = vpop.permute.xlu2 %427 }
 0x21a   : > { %v1520_v47 = vmul.f32 %v428_v34, %v1079_v0  ;;  %v1523_v48 = vmul.f32 %v428_v34, %v1081_v1 }
 0x229   : > { %v446_v46 = vpop.permute.xlu2 %445 }
 0x22a   : > { %v1538_v0 = vmul.f32 %v446_v46, %v1097_v9  ;;  %v1541_v1 = vmul.f32 %v446_v46, %v1099_v10 }
 0x230   : > { %v440_v49 = vpop.permute.xlu1 %439  ;;  %v434_v50 = vpop.permute.xlu0 %433 }
 0x231   : > { %v1526_v51 = vmul.f32 %v440_v49, %v1083_v2  ;;  %v1529_v52 = vmul.f32 %v440_v49, %v1089_v5  ;;  %v1532_v53 = vmul.f32 %v434_v50, %v1093_v7  ;;  %v1535_v54 = vmul.f32 %v434_v50, %v1095_v8  ;;  %v1011_v8 = vpop.eup %1010 }
 0x232   : > { %v474_v62 = vmul.f32 32.0, %v1011_v8  ;;  %vm478_vm11 = vweird.f32 %v1011_v8 }
 0x233   : > { %v482_v55 = vmax.f32 %v1520_v47, %v1526_v51  ;;  %v491_v2 = vmax.f32 %v1523_v48, %v1529_v52  ;;  %v455_v5 = vadd.f32 %v1532_v53, %v1520_v47  ;;  %v464_v7 = vadd.f32 %v1535_v54, %v1523_v48 }
 0x234   : > { %v483_v9 = vmax.f32 %v1532_v53, %v1538_v0  ;;  %v492_v10 = vmax.f32 %v1535_v54, %v1541_v1  ;;  %v475_v15 = vsub.f32 1.0, %v474_v62 }
 0x235   : > { %v456_v56 = vadd.f32 %v455_v5, %v1526_v51  ;;  %v465_v57 = vadd.f32 %v464_v7, %v1529_v52 }
 0x236   : > { %v484_v58 = vmax.f32 %v482_v55, %v483_v9  ;;  %v493_v59 = vmax.f32 %v491_v2, %v492_v10  ;;  %v476_v23 = vmul.f32 %v1011_v8, %v475_v15 }
 0x237   : > { %v457_v60 = vadd.f32 %v456_v56, %v1538_v0  ;;  %v466_v61 = vadd.f32 %v465_v57, %v1541_v1 }
 0x238   : > { %v485_v63 = vrot.slane %v484_v58, 4  ;;  %v494_v3 = vrot.slane %v493_v59, 4  ;;  %v477_v31 = vadd.f32 %v1011_v8, %v476_v23 }
 0x239   : > { %v458_v4 = vrot.slane %v457_v60, 4  ;;  %v467_v6 = vrot.slane %v466_v61, 4 }
 0x23a   : > { %v486_v11 = vmax.f32 %v484_v58, %v485_v63  ;;  %v495_v12 = vmax.f32 %v493_v59, %v494_v3  ;;  %v479_v34 = vsel %vm478_vm11, %v1011_v8, %v477_v31 }
 0x23b   : > { %v459_v13 = vadd.f32 %v458_v4, %v457_v60  ;;  %v468_v14 = vadd.f32 %v467_v6, %v466_v61 }
 0x23c   : > { %v487_v16 = vrot.slane %v486_v11, 2  ;;  %v496_v17 = vrot.slane %v495_v12, 2 }
 0x23d   : > { %v460_v18 = vrot.slane %v459_v13, 2  ;;  %v469_v19 = vrot.slane %v468_v14, 2 }
 0x23e   : > { %v488_v20 = vmax.f32 %v486_v11, %v487_v16  ;;  %v497_v21 = vmax.f32 %v495_v12, %v496_v17 }
 0x23f   : > { %v461_v22 = vadd.f32 %v460_v18, %v459_v13  ;;  %v470_v24 = vadd.f32 %v469_v19, %v468_v14 }
 0x240   : > { %v489_v25 = vrot.slane %v488_v20, 1  ;;  %v498_v26 = vrot.slane %v497_v21, 1 }
 0x241   : > { %v462_v29 = vrot.slane %v461_v22, 1  ;;  %v471_v30 = vrot.slane %v470_v24, 1 }
 0x242   : > { %v490_v27 = vmax.f32 %v488_v20, %v489_v25  ;;  %v499_v28 = vmax.f32 %v497_v21, %v498_v26 }
 0x243   : > { %v463_v32 = vadd.f32 %v462_v29, %v461_v22  ;;  %v472_v33 = vadd.f32 %v471_v30, %v470_v24 }
 0x244   : > { %645 = vmatmul.f32.vlgmr.msrb.gmra.mxu2 %v490_v27  ;;  %665 = vmatmul.f32.vlgmr.msrb.gmra.mxu3 %v499_v28 }
 0x245   : > { %685 = vmatmul.f32.vlgmr.msrb.gmra.mxu0 %v490_v27  ;;  %705 = vmatmul.f32.vlgmr.msrb.gmra.mxu1 %v499_v28  ;;  %v480_v35 = vmul.f32 %v479_v34, %v463_v32  ;;  %v481_v36 = vmul.f32 %v479_v34, %v472_v33 }
 0x24c   : > { %725 = vmatmul.f32.vlgmr.msra.gmra.mxu2 %v480_v35  ;;  %745 = vmatmul.f32.vlgmr.msra.gmra.mxu3 %v481_v36 }
 0x24d   : > { %765 = vmatmul.f32.vlgmr.msra.gmra.mxu0 %v480_v35  ;;  %785 = vmatmul.f32.vlgmr.msra.gmra.mxu1 %v481_v36 }
 0x2c2   : > { %v686_v37 = vpop.f32.mrf.mxu0  ;;  %v706_v38 = vpop.f32.mrf.mxu1 }
 0x2c3   : > { %v707_v41 = vadd.f32 %v706_v38, %v686_v37 }
 0x2c7   : > { %v646_v39 = vpop.f32.mrf.mxu2  ;;  %v666_v40 = vpop.f32.mrf.mxu3 }
 0x2c8   : > { %v667_v49 = vadd.f32 %v666_v40, %v646_v39 }
 0x2ca   : > { %v766_v42 = vpop.f32.mrf.mxu0  ;;  %v786_v44 = vpop.f32.mrf.mxu1 }
 0x2cb   : > { %v767_v43 = vadd.f32 %v766_v42, %v707_v41 }
 0x2cd   : > { %v787_v46 = vadd.f32 %v786_v44, %v767_v43 }
 0x2cf   : > { %v791_v50 = vadd.f32 %v789_v45, %v787_v46  ;;  %v726_v55 = vpop.f32.mrf.mxu2  ;;  %v746_v7 = vpop.f32.mrf.mxu3 }
 0x2d0   : > { %v727_v2 = vadd.f32 %v726_v55, %v667_v49 }
 0x2d1   : > { %v984_v5 = vmul.f32 -1.442695, %v791_v50 }
 0x2d2   : > { %v747_v8 = vadd.f32 %v746_v7, %v727_v2 }
 0x2d3   : > { %1012 = vpow2.f32 %v984_v5 }
 0x2d4   : > { %v790_v9 = vadd.f32 %v789_v45, %v747_v8 }
 0x2d6   : > { %v983_v10 = vmul.f32 -1.442695, %v790_v9 }
 0x2d8   : > { %1014 = vpow2.f32 %v983_v10 }
 0x2d9   : > { %v1013_v56 = vpop.eup %1012 }
 0x2da   : > { %v799_v57 = vadd.f32 1.0, %v1013_v56 }
 0x2dc   : > { %1016 = vrcp.f32 %v799_v57  ;;  %v826_v63 = vand.u32 2147483648, %v799_v57  ;;  %v824_v6 = vand.u32 2147483647, %v799_v57  ;;  %vm820_vm13 = vweird.f32 %v799_v57 }
 0x2de   : > { %v1015_v58 = vpop.eup %1014  ;;  %v827_v13 = vor.u32 1.1754944e-38, %v826_v63  ;;  %vm825_vm15 = vcmp.eq.f32.partialorder %v824_v6, 8.507059e+37 }
 0x2df   : > { %v798_v59 = vadd.f32 1.0, %v1015_v58 }
 0x2e1   : > { %1018 = vrcp.f32 %v798_v59  ;;  %v811_v16 = vand.u32 2147483648, %v798_v59  ;;  %v809_v19 = vand.u32 2147483647, %v798_v59  ;;  %vm805_vm1 = vweird.f32 %v798_v59 }
 0x2e2   : > { %v1017_v60 = vpop.eup %1016 }
 0x2e3   : > { %v816_v61 = vmul.f32 %v1017_v60, %v799_v57  ;;  %vm821_vm12 = vweird.f32 %v1017_v60  ;;  %v812_v25 = vor.u32 1.1754944e-38, %v811_v16  ;;  %vm810_vm3 = vcmp.eq.f32.partialorder %v809_v19, 8.507059e+37 }
 0x2e4   : > { %vm822_vm14 = vmor %vm820_vm13, %vm821_vm12 }
 0x2e5   : > { %v817_v62 = vsub.f32 1.0, %v816_v61 }
 0x2e7   : > { %v1019_v3 = vpop.eup %1018  ;;  %v818_v4 = vmul.f32 %v1017_v60, %v817_v62 }
 0x2e8   : > { %v801_v11 = vmul.f32 %v1019_v3, %v798_v59  ;;  %vm806_vm0 = vweird.f32 %v1019_v3 }
 0x2e9   : > { %v819_v12 = vadd.f32 %v1017_v60, %v818_v4  ;;  %vm807_vm2 = vmor %vm805_vm1, %vm806_vm0 }
 0x2ea   : > { %v802_v14 = vsub.f32 1.0, %v801_v11 }
 0x2eb   : > { %v823_v15 = vsel %vm822_vm14, %v1017_v60, %v819_v12 }
 0x2ec   : > { %v828_v17 = vsel %vm825_vm15, %v827_v13, %v823_v15  ;;  %v803_v18 = vmul.f32 %v1019_v3, %v802_v14 }
 0x2ed   : > { %v831_v20 = vperm.slane %v828_v17, 0 }
 0x2ee   : > { %v804_v21 = vadd.f32 %v1019_v3, %v803_v18 }
 0x2ef   : > { %v833_v22 = vmul.f32 %v831_v20, %v1523_v48  ;;  %v835_v23 = vmul.f32 %v831_v20, %v1535_v54  ;;  %v837_v24 = vmul.f32 %v831_v20, %v1529_v52  ;;  %v839_v26 = vmul.f32 %v831_v20, %v1541_v1 }
 0x2f0   : > { %v808_v27 = vsel %vm807_vm2, %v1019_v3, %v804_v21 }
 0x2f1   : > { %841 = vst [vmem:[%s225_s16 + $0x8] sm:$0xff] %v833_v22  ;;  %v813_v28 = vsel %vm810_vm3, %v812_v25, %v808_v27 }
 0x2f2   : > { %843 = vst [vmem:[%s225_s16 + $0x18] sm:$0xff] %v835_v23  ;;  %v830_v29 = vperm.slane %v813_v28, 0 }
 0x2f3   : > { %845 = vst [vmem:[%s225_s16 + $0x28] sm:$0xff] %v837_v24 }
 0x2f4   : > { %847 = vst [vmem:[%s225_s16 + $0x38] sm:$0xff] %v839_v26  ;;  %v832_v30 = vmul.f32 %v830_v29, %v1520_v47  ;;  %v834_v48 = vmul.f32 %v830_v29, %v1532_v53  ;;  %v836_v54 = vmul.f32 %v830_v29, %v1526_v51  ;;  %v838_v52 = vmul.f32 %v830_v29, %v1538_v0 }
 0x2f6   : > { %840 = vst [vmem:[%s225_s16] sm:$0xff] %v832_v30 }
 0x2f7   : > { %842 = vst [vmem:[%s225_s16 + $0x10] sm:$0xff] %v834_v48 }
 0x2f8   : > { %844 = vst [vmem:[%s225_s16 + $0x20] sm:$0xff] %v836_v54 }
 0x2f9   : > { %846 = vst [vmem:[%s225_s16 + $0x30] sm:$0xff] %v838_v52 }
 0x2fa PF: > { %s16_s20 = sadd.s32 1, %s1026_s20  }
 0x2fb   : > { %p13_p4 = scmp.ge.s32.totalorder %s16_s20, 4  }
 0x2fd   :  { %15 = sbr.rel (!%p13_p4) target bundleno = 2 (0x2), region = 71 }

</bundles_post_ra>
